<compile_context>
chip_gen: v5e
topology: v5e:2x2
jax: 0.10.0
libtpu: 0.0.40
codegen_flags: <defaults>
</compile_context>

<pallas_src>
import jax
import jax.numpy as jnp
from jax import lax
from jax.experimental import pallas as pl
from jax.experimental.pallas import tpu as pltpu


def _round_up(x, m):
    return ((x + m - 1) // m) * m


# --------------------------------------------------------------- kernels ----

def _critic_kernel_batch_major(state_ref, action_ref, w1s_ref, w1a_ref, b1_ref,
                               w2_ref, b2_ref, w3_ref, b3_ref, q_ref):
    """state/action tiles are (TB, features); weights stored (in, out)."""
    h1 = (jnp.dot(state_ref[...], w1s_ref[...], preferred_element_type=jnp.float32)
          + jnp.dot(action_ref[...], w1a_ref[...], preferred_element_type=jnp.float32))
    h1 = jnp.maximum(h1 + b1_ref[...], 0.0)                       # (TB, F1)
    h2 = jnp.dot(h1, w2_ref[...], preferred_element_type=jnp.float32)
    h2 = jnp.maximum(h2 + b2_ref[...], 0.0)                       # (TB, F2)
    # (1, F2) x (TB, F2)^T -> lane-dense (1, TB) output row.
    q = lax.dot_general(w3_ref[...], h2, (((1,), (1,)), ((), ())),
                        preferred_element_type=jnp.float32)
    q_ref[...] = q + b3_ref[0]                                    # scalar bias (SMEM)


def _critic_kernel_feature_major(state_ref, action_ref, w1s_ref, w1a_ref, b1_ref,
                                 w2_ref, b2_ref, w3_ref, b3_ref, q_ref):
    """state/action tiles are (features, TB); weights pre-transposed (out, in)."""
    h1 = (jnp.dot(w1s_ref[...], state_ref[...], preferred_element_type=jnp.float32)
          + jnp.dot(w1a_ref[...], action_ref[...], preferred_element_type=jnp.float32))
    h1 = jnp.maximum(h1 + b1_ref[...], 0.0)                       # (F1, TB) + (F1, 1)
    h2 = jnp.dot(w2_ref[...], h1, preferred_element_type=jnp.float32)
    h2 = jnp.maximum(h2 + b2_ref[...], 0.0)                       # (F2, TB)
    q = jnp.dot(w3_ref[...], h2, preferred_element_type=jnp.float32)   # (1, TB)
    q_ref[...] = q + b3_ref[0]


# ---------------------------------------------------------------- params ----

def init_params(key, input_dims, n_actions, fc1_dims, fc2_dims):
    """Matches PyTorch nn.Linear default init: U(-1/sqrt(fan_in), 1/sqrt(fan_in))."""
    def linear(k, fan_in, fan_out):
        kw, kb = jax.random.split(k)
        bound = 1.0 / jnp.sqrt(jnp.float32(fan_in))
        w = jax.random.uniform(kw, (fan_in, fan_out), jnp.float32, -bound, bound)
        b = jax.random.uniform(kb, (1, fan_out), jnp.float32, -bound, bound)
        return w, b

    k1, k2, k3 = jax.random.split(key, 3)
    w1, b1 = linear(k1, input_dims + n_actions, fc1_dims)
    w2, b2 = linear(k2, fc1_dims, fc2_dims)
    w3, b3 = linear(k3, fc2_dims, 1)
    return (w1, b1, w2, b2, w3, b3)


def prepare_params(params, input_dims, n_actions, *, features_first=False):
    """One-time layout prep (do this OUTSIDE the training step):
    split fc1 into state/action parts, zero-pad hidden dims to 128,
    lay out q1 weights as a (1, F2) row, keep b3 as an SMEM scalar."""
    w1, b1, w2, b2, w3, b3 = params
    fc1 = w1.shape[1]
    fc2 = w2.shape[1]
    F1 = _round_up(fc1, 128)
    F2 = _round_up(fc2, 128)

    w1s = jnp.zeros((input_dims, F1), jnp.float32).at[:, :fc1].set(w1[:input_dims, :])
    w1a = jnp.zeros((n_actions, F1), jnp.float32).at[:, :fc1].set(w1[input_dims:, :])
    b1p = jnp.zeros((1, F1), jnp.float32).at[:, :fc1].set(b1)
    w2p = jnp.zeros((F1, F2), jnp.float32).at[:fc1, :fc2].set(w2)
    b2p = jnp.zeros((1, F2), jnp.float32).at[:, :fc2].set(b2)
    w3r = jnp.zeros((1, F2), jnp.float32).at[:, :fc2].set(w3.reshape(1, fc2))
    b3s = b3.reshape(1).astype(jnp.float32)

    if features_first:
        return (w1s.T, w1a.T, b1p.reshape(F1, 1),
                w2p.T, b2p.reshape(F2, 1), w3r, b3s)
    return (w1s, w1a, b1p, w2p, b2p, w3r, b3s)


# ------------------------------------------------------------- tile logic ----

def _vmem_limit_bytes():
    """Per-generation VMEM budget (scoped limit we request)."""
    try:
        kind = jax.devices()[0].device_kind.lower()
    except Exception:
        kind = ""
    if ("v5" in kind) or ("v6" in kind):   # 128 MiB physical VMEM per TC
        return 64 * 1024 * 1024
    return 32 * 1024 * 1024                # v7x (64 MiB physical) / unknown


def _per_row_vmem_bytes(input_dims, n_actions, F1, F2, features_first):
    """Estimated VMEM bytes per batch row for one grid step."""
    if features_first:
        stream = 2 * (_round_up(input_dims, 8) + _round_up(n_actions, 8)) * 4
    else:  # lane-padded streamed tiles
        stream = 2 * (_round_up(input_dims, 128) + _round_up(n_actions, 128)) * 4
    return stream + (F1 + F2) * 4 + 16     # + h1/h2 intermediates + out row


def _choose_tb(batch, block_batch, per_row_bytes, vmem_budget):
    if batch <= 256:
        # single full-extent block: (8,128) rule satisfied via full-dim blocks
        return batch
    cap_vmem = max(128, ((int(vmem_budget * 0.7) // per_row_bytes) // 128) * 128)
    cap_split = _round_up(pl.cdiv(batch, 2), 128)   # keep grid >= 2 (megacore)
    return max(128, min(_round_up(block_batch, 128), cap_vmem, cap_split))


# ---------------------------------------------------------------- forward ----

def critic_forward(state, action, prepared_params, *, features_first=False,
                   block_batch=4096):
    """Pallas CriticNetwork.forward(state, action) -> (batch, 1) float32.

    features_first=False: state (batch, input_dims), action (batch, n_actions).
    features_first=True : state (input_dims, batch), action (n_actions, batch),
                          with params from prepare_params(features_first=True).
    """
    w1s, w1a, b1, w2, b2, w3, b3 = prepared_params
    state = state.astype(jnp.float32)
    action = action.astype(jnp.float32)

    if features_first:
        input_dims, batch = state.shape
        n_actions = action.shape[0]
        F1, F2 = w2.shape[1], w2.shape[0]     # w2 stored (F2, F1)
        kernel = _critic_kernel_feature_major
    else:
        batch, input_dims = state.shape
        n_actions = action.shape[1]
        F1, F2 = w2.shape                     # w2 stored (F1, F2)
        kernel = _critic_kernel_batch_major

    vmem_budget = _vmem_limit_bytes()
    per_row = _per_row_vmem_bytes(input_dims, n_actions, F1, F2, features_first)
    TB = _choose_tb(batch, block_batch, per_row, vmem_budget)
    # No input padding: the trailing partial block reads undefined rows; those
    # rows only influence their own (masked-out) output columns.
    grid = (pl.cdiv(batch, TB),)

    if features_first:
        in_specs = [
            pl.BlockSpec((input_dims, TB), lambda i: (0, i)),    # state tile (lane-dense)
            pl.BlockSpec((n_actions, TB), lambda i: (0, i)),     # action tile
            pl.BlockSpec((F1, input_dims), lambda i: (0, 0)),    # W1_state^T (resident)
            pl.BlockSpec((F1, n_actions), lambda i: (0, 0)),     # W1_action^T (resident)
            pl.BlockSpec((F1, 1), lambda i: (0, 0)),             # b1
            pl.BlockSpec((F2, F1), lambda i: (0, 0)),            # W2^T (resident)
            pl.BlockSpec((F2, 1), lambda i: (0, 0)),             # b2
            pl.BlockSpec((1, F2), lambda i: (0, 0)),             # w3 row
            pl.BlockSpec(memory_space=pltpu.MemorySpace.SMEM),   # b3 scalar
        ]
    else:
        in_specs = [
            pl.BlockSpec((TB, input_dims), lambda i: (i, 0)),    # state tile
            pl.BlockSpec((TB, n_actions), lambda i: (i, 0)),     # action tile
            pl.BlockSpec((input_dims, F1), lambda i: (0, 0)),    # W1_state (resident)
            pl.BlockSpec((n_actions, F1), lambda i: (0, 0)),     # W1_action (resident)
            pl.BlockSpec((1, F1), lambda i: (0, 0)),             # b1
            pl.BlockSpec((F1, F2), lambda i: (0, 0)),            # W2 (resident)
            pl.BlockSpec((1, F2), lambda i: (0, 0)),             # b2
            pl.BlockSpec((1, F2), lambda i: (0, 0)),             # w3 row
            pl.BlockSpec(memory_space=pltpu.MemorySpace.SMEM),   # b3 scalar
        ]

    q_row = pl.pallas_call(
        kernel,
        out_shape=jax.ShapeDtypeStruct((1, batch), jnp.float32),
        grid=grid,
        in_specs=in_specs,
        out_specs=pl.BlockSpec((1, TB), lambda i: (0, i)),       # lane-dense q row
        compiler_params=pltpu.CompilerParams(
            dimension_semantics=("parallel",),
            vmem_limit_bytes=vmem_budget),
    )(state, action, w1s, w1a, b1, w2, b2, w3, b3)

    return q_row.reshape(batch, 1)


def critic_forward_ref(state, action, params):
    """Pure-JAX reference (mirrors the PyTorch forward)."""
    w1, b1, w2, b2, w3, b3 = params
    x = jnp.concatenate([state, action], axis=1)
    h1 = jnp.maximum(x @ w1 + b1, 0.0)
    h2 = jnp.maximum(h1 @ w2 + b2, 0.0)
    return h2 @ w3 + b3


# TODO(synk): the Adam optimizer, checkpoint save/load and device placement are
# host-side training utilities, not part of the forward pass; not ported.

if __name__ == "__main__":
    input_dims = 16
    n_actions = 4
    fc1_dims = 32
    fc2_dims = 32

    key = jax.random.PRNGKey(0)
    k_state, k_action, k_params = jax.random.split(key, 3)

    params = init_params(k_params, input_dims, n_actions, fc1_dims, fc2_dims)
    prep_bm = prepare_params(params, input_dims, n_actions)
    prep_fm = prepare_params(params, input_dims, n_actions, features_first=True)

    # --- tiny batch: single full-extent block ---
    state = jax.random.normal(k_state, (2, input_dims), jnp.float32)
    action = jax.random.normal(k_action, (2, n_actions), jnp.float32)
    q = jax.block_until_ready(critic_forward(state, action, prep_bm))
    q_ref = critic_forward_ref(state, action, params)
    assert q.shape == (2, 1)
    assert jnp.allclose(q, q_ref, atol=1e-5, rtol=1e-5)

    # --- larger batch: no input padding, partial trailing block, grid >= 2 ---
    k_s2, k_a2 = jax.random.split(jax.random.PRNGKey(1))
    state2 = jax.random.normal(k_s2, (600, input_dims), jnp.float32)
    action2 = jax.random.normal(k_a2, (600, n_actions), jnp.float32)
    q2 = jax.block_until_ready(critic_forward(state2, action2, prep_bm))
    q2_ref = critic_forward_ref(state2, action2, params)
    assert q2.shape == (600, 1)
    assert jnp.allclose(q2, q2_ref, atol=1e-5, rtol=1e-5)

    # --- feature-major (lane-dense streamed inputs) path on the same data ---
    q3 = jax.block_until_ready(
        critic_forward(state2.T, action2.T, prep_fm, features_first=True))
    assert q3.shape == (600, 1)
    assert jnp.allclose(q3, q2_ref, atol=1e-5, rtol=1e-5)

    print("KERNEL_OK")
</pallas_src>

<mosaic_0001>
module attributes {stable_mosaic.version = 11 : i64} {
  func.func @_critic_kernel_batch_major(%arg0: i32, %arg1: memref<2x16xf32, #tpu.memory_space<vmem>>, %arg2: memref<2x4xf32, #tpu.memory_space<vmem>>, %arg3: memref<16x128xf32, #tpu.memory_space<vmem>>, %arg4: memref<4x128xf32, #tpu.memory_space<vmem>>, %arg5: memref<1x128xf32, #tpu.memory_space<vmem>>, %arg6: memref<128x128xf32, #tpu.memory_space<vmem>>, %arg7: memref<1x128xf32, #tpu.memory_space<vmem>>, %arg8: memref<1x128xf32, #tpu.memory_space<vmem>>, %arg9: memref<1xf32, #tpu.memory_space<smem>>, %arg10: memref<1x2xf32, #tpu.memory_space<vmem>>) attributes {dimension_semantics = [#tpu.dimension_semantics<parallel>], iteration_bounds = array<i64: 1>, scalar_prefetch = 0 : i64, scratch_operands = 0 : i64, tpu.core_type = #tpu.core_type<tc>, window_params = [{transform_indices = @transform_0, window_bounds = array<i64: 2, 16>}, {transform_indices = @transform_1, window_bounds = array<i64: 2, 4>}, {pipeline_mode = #tpu.pipeline_mode<synchronous>, transform_indices = @transform_2, window_bounds = array<i64: 16, 128>}, {pipeline_mode = #tpu.pipeline_mode<synchronous>, transform_indices = @transform_3, window_bounds = array<i64: 4, 128>}, {pipeline_mode = #tpu.pipeline_mode<synchronous>, transform_indices = @transform_4, window_bounds = array<i64: 1, 128>}, {pipeline_mode = #tpu.pipeline_mode<synchronous>, transform_indices = @transform_5, window_bounds = array<i64: 128, 128>}, {pipeline_mode = #tpu.pipeline_mode<synchronous>, transform_indices = @transform_6, window_bounds = array<i64: 1, 128>}, {pipeline_mode = #tpu.pipeline_mode<synchronous>, transform_indices = @transform_7, window_bounds = array<i64: 1, 128>}, {transform_indices = @transform_8, window_bounds = array<i64: 1>}, {transform_indices = @transform_9, window_bounds = array<i64: 1, 2>}]} {
    %c0 = arith.constant 0 : index
    %c0_0 = arith.constant 0 : index
    %0 = vector.load %arg1[%c0, %c0_0] : memref<2x16xf32, #tpu.memory_space<vmem>>, vector<2x16xf32>
    %c0_1 = arith.constant 0 : index
    %c0_2 = arith.constant 0 : index
    %1 = vector.load %arg3[%c0_1, %c0_2] : memref<16x128xf32, #tpu.memory_space<vmem>>, vector<16x128xf32>
    %cst = arith.constant dense<0.000000e+00> : vector<2x128xf32>
    %2 = tpu.matmul %0, %1, %cst {dimension_numbers = #tpu.dot_dimension_numbers<[1], [0], [0], [1], [0, 0, 1, 1], [], []>} : vector<2x16xf32>, vector<16x128xf32>, vector<2x128xf32> -> vector<2x128xf32>
    %c0_3 = arith.constant 0 : index
    %c0_4 = arith.constant 0 : index
    %3 = vector.load %arg2[%c0_3, %c0_4] : memref<2x4xf32, #tpu.memory_space<vmem>>, vector<2x4xf32>
    %c0_5 = arith.constant 0 : index
    %c0_6 = arith.constant 0 : index
    %4 = vector.load %arg4[%c0_5, %c0_6] : memref<4x128xf32, #tpu.memory_space<vmem>>, vector<4x128xf32>
    %cst_7 = arith.constant dense<0.000000e+00> : vector<2x128xf32>
    %5 = tpu.matmul %3, %4, %cst_7 {dimension_numbers = #tpu.dot_dimension_numbers<[1], [0], [0], [1], [0, 0, 1, 1], [], []>} : vector<2x4xf32>, vector<4x128xf32>, vector<2x128xf32> -> vector<2x128xf32>
    %6 = arith.addf %2, %5 : vector<2x128xf32>
    %c0_8 = arith.constant 0 : index
    %c0_9 = arith.constant 0 : index
    %7 = vector.load %arg5[%c0_8, %c0_9] : memref<1x128xf32, #tpu.memory_space<vmem>>, vector<1x128xf32>
    %8 = vector.broadcast %7 : vector<1x128xf32> to vector<2x128xf32>
    %9 = arith.addf %6, %8 : vector<2x128xf32>
    %cst_10 = arith.constant 0.000000e+00 : f32
    %10 = vector.broadcast %cst_10 : f32 to vector<2x128xf32>
    %11 = arith.maximumf %9, %10 : vector<2x128xf32>
    %c0_11 = arith.constant 0 : index
    %c0_12 = arith.constant 0 : index
    %12 = vector.load %arg6[%c0_11, %c0_12] : memref<128x128xf32, #tpu.memory_space<vmem>>, vector<128x128xf32>
    %cst_13 = arith.constant dense<0.000000e+00> : vector<2x128xf32>
    %13 = tpu.matmul %11, %12, %cst_13 {dimension_numbers = #tpu.dot_dimension_numbers<[1], [0], [0], [1], [0, 0, 1, 1], [], []>} : vector<2x128xf32>, vector<128x128xf32>, vector<2x128xf32> -> vector<2x128xf32>
    %c0_14 = arith.constant 0 : index
    %c0_15 = arith.constant 0 : index
    %14 = vector.load %arg7[%c0_14, %c0_15] : memref<1x128xf32, #tpu.memory_space<vmem>>, vector<1x128xf32>
    %15 = vector.broadcast %14 : vector<1x128xf32> to vector<2x128xf32>
    %16 = arith.addf %13, %15 : vector<2x128xf32>
    %cst_16 = arith.constant 0.000000e+00 : f32
    %17 = vector.broadcast %cst_16 : f32 to vector<2x128xf32>
    %18 = arith.maximumf %16, %17 : vector<2x128xf32>
    %c0_17 = arith.constant 0 : index
    %c0_18 = arith.constant 0 : index
    %19 = vector.load %arg8[%c0_17, %c0_18] : memref<1x128xf32, #tpu.memory_space<vmem>>, vector<1x128xf32>
    %cst_19 = arith.constant dense<0.000000e+00> : vector<1x2xf32>
    %20 = tpu.matmul %19, %18, %cst_19 {dimension_numbers = #tpu.dot_dimension_numbers<[1], [1], [0], [0], [0, 0, 1, 0], [], []>} : vector<1x128xf32>, vector<2x128xf32>, vector<1x2xf32> -> vector<1x2xf32>
    %c0_20 = arith.constant 0 : index
    %21 = memref.load %arg9[%c0_20] : memref<1xf32, #tpu.memory_space<smem>>
    %22 = vector.broadcast %21 : f32 to vector<1x2xf32>
    %23 = arith.addf %20, %22 : vector<1x2xf32>
    %c0_21 = arith.constant 0 : index
    %c0_22 = arith.constant 0 : index
    %24 = vector.load %arg10[%c0_21, %c0_22] : memref<1x2xf32, #tpu.memory_space<vmem>>, vector<1x2xf32>
    tpu.vector_store %arg10[%c0_21, %c0_22], %23 {strides = array<i32>} : memref<1x2xf32, #tpu.memory_space<vmem>>, vector<1x2xf32>,
    return
  }
  func.func @transform_0(%arg0: i32) -> (i32, i32) {
    %c0_i32 = arith.constant 0 : i32
    %c0_i32_0 = arith.constant 0 : i32
    return %arg0, %c0_i32 : i32, i32
  }
  func.func @transform_1(%arg0: i32) -> (i32, i32) {
    %c0_i32 = arith.constant 0 : i32
    %c0_i32_0 = arith.constant 0 : i32
    return %arg0, %c0_i32 : i32, i32
  }
  func.func @transform_2(%arg0: i32) -> (i32, i32) {
    %c0_i32 = arith.constant 0 : i32
    %c0_i32_0 = arith.constant 0 : i32
    %c0_i32_1 = arith.constant 0 : i32
    return %c0_i32, %c0_i32_0 : i32, i32
  }
  func.func @transform_3(%arg0: i32) -> (i32, i32) {
    %c0_i32 = arith.constant 0 : i32
    %c0_i32_0 = arith.constant 0 : i32
    %c0_i32_1 = arith.constant 0 : i32
    return %c0_i32, %c0_i32_0 : i32, i32
  }
  func.func @transform_4(%arg0: i32) -> (i32, i32) {
    %c0_i32 = arith.constant 0 : i32
    %c0_i32_0 = arith.constant 0 : i32
    %c0_i32_1 = arith.constant 0 : i32
    return %c0_i32, %c0_i32_0 : i32, i32
  }
  func.func @transform_5(%arg0: i32) -> (i32, i32) {
    %c0_i32 = arith.constant 0 : i32
    %c0_i32_0 = arith.constant 0 : i32
    %c0_i32_1 = arith.constant 0 : i32
    return %c0_i32, %c0_i32_0 : i32, i32
  }
  func.func @transform_6(%arg0: i32) -> (i32, i32) {
    %c0_i32 = arith.constant 0 : i32
    %c0_i32_0 = arith.constant 0 : i32
    %c0_i32_1 = arith.constant 0 : i32
    return %c0_i32, %c0_i32_0 : i32, i32
  }
  func.func @transform_7(%arg0: i32) -> (i32, i32) {
    %c0_i32 = arith.constant 0 : i32
    %c0_i32_0 = arith.constant 0 : i32
    %c0_i32_1 = arith.constant 0 : i32
    return %c0_i32, %c0_i32_0 : i32, i32
  }
  func.func @transform_8(%arg0: i32) -> i32 {
    %c0_i32 = arith.constant 0 : i32
    %c0_i32_0 = arith.constant 0 : i32
    return %c0_i32 : i32
  }
  func.func @transform_9(%arg0: i32) -> (i32, i32) {
    %c0_i32 = arith.constant 0 : i32
    %c0_i32_0 = arith.constant 0 : i32
    return %c0_i32, %arg0 : i32, i32
  }
}

</mosaic_0001>

<bundles_post_ra>
// kernel: tpu_custom_call.1
= control target key start
LH: loop header
LB: loop body
LE: loop exit
PB: predicated region body
PF: predicated region fallthrough
CT: control target
= control target key end

     0   :  { %15 = vsyncpa [#allocation4], 0  ;;  %s468_s0 = inlined_call_operand.hbm [shape: f32[2,16], index: 0, kind: input, shape index: {}]   ;;  %s469_s1 = inlined_call_operand.hbm [shape: f32[2,4], index: 1, kind: input, shape index: {}]   ;;  %s470_s2 = inlined_call_operand.hbm [shape: f32[16,128], index: 2, kind: input, shape index: {}]   ;;  %s471_s3 = inlined_call_operand.vmem [shape: f32[4,128], index: 3, kind: input, shape index: {}]   ;;  %s472_s4 = inlined_call_operand.vmem [shape: f32[1,128], index: 4, kind: input, shape index: {}]   ;;  %s473_s5 = inlined_call_operand.hbm [shape: f32[128,128], index: 5, kind: input, shape index: {}]   ;;  %s474_s6 = inlined_call_operand.vmem [shape: f32[1,128], index: 6, kind: input, shape index: {}]   ;;  %s475_s7 = inlined_call_operand.vmem [shape: f32[1,128], index: 7, kind: input, shape index: {}]   ;;  %s476_s8 = inlined_call_operand.<no memory space> [shape: f32[1], index: 8, kind: input, shape index: {}]   ;;  %s477_s9 = inlined_call_operand.hbm [shape: f32[1,2], index: 9, kind: output, shape index: {}]  }
   0x1   :  { %16 = vsyncpa [#allocation7], 0 }
   0x2   :  { %17 = vsyncpa [#allocation10], 0  ;;  %s35_s11 = sshll.u32 %s469_s1, 4  ;;  %s36_s11 = int_to_ptr.hbm [resolvable:$true] %s35_s11 }
   0x3   :  { %18 = vsyncpa [#allocation5], 0  ;;  %s381_s12 = smov [#allocation6]   ;;  %s24_s16 = sshll.u32 %s468_s0, 4  ;;  %s25_s16 = int_to_ptr.hbm [resolvable:$true] %s24_s16 }
   0x4   :  { %s37_s13 = sshll.u32 %s381_s12, 4  ;;  %s382_s17 = smov [#allocation3]   ;;  %s38_s13 = int_to_ptr.vmem [resolvable:$true] %s37_s13 }
   0x5   :  { %40 = dma.hbm_to_vmem [thread:$0]  %s36_s11, 32, %s38_s13, [#allocation7]  }
   0x6   :  { %s26_s18 = sshll.u32 %s382_s17, 4  ;;  %s45_s21 = sshll.u32 %s470_s2, 4  ;;  %s27_s18 = int_to_ptr.vmem [resolvable:$true] %s26_s18  ;;  %s46_s21 = int_to_ptr.hbm [resolvable:$true] %s45_s21 }
   0x7   :  { %29 = dma.hbm_to_vmem [thread:$0]  %s25_s16, 32, %s27_s18, [#allocation4]  }
   0x8   :  { %s383_s1 = smov [#allocation8]   ;;  %s62_s25 = sshll.u32 %s473_s5, 4  ;;  %s63_s25 = int_to_ptr.hbm [resolvable:$true] %s62_s25 }
   0x9   :  { %s47_s22 = sshll.u32 %s383_s1, 4  ;;  %s384_s26 = smov 128   ;;  %s48_s22 = int_to_ptr.vmem [resolvable:$true] %s47_s22 }
   0xa   :  { %s385_s0 = smov 8   ;;  %s386_s27 = smov [#allocation9]  }
   0xb   :  { %53 = dma.hbm_to_vmem [thread:$0]  %s46_s21, 256, %s48_s22, [#allocation7], %s384_s26, %s384_s26, %s385_s0  }
   0xc   :  { %s64_s28 = sshll.u32 %s386_s27, 4  ;;  %s65_s28 = int_to_ptr.vmem [resolvable:$true] %s64_s28 }
   0xd   :  { %70 = dma.hbm_to_vmem [thread:$0]  %s63_s25, 2048, %s65_s28, [#allocation10], %s384_s26, %s384_s26, %s385_s0  }
   0xe   :  { %373 = dma.done.wait [#allocation4], 32  }
   0xf   :  { %374 = vsyncadd [#allocation4], 4294967264 }
  0x10   :  { %375 = dma.done.wait [#allocation7], 288  }
  0x11   :  { %376 = vsyncadd [#allocation7], 4294967008 }
  0x12   :  { %377 = dma.done.wait [#allocation10], 2048  }
  0x13   :  { %378 = vsyncadd [#allocation10], 4294965248  ;;  %vm102_vm0 = vcmask 1043456   ;;  %vm98_vm1 = vcmask 31744   ;;  %v95_v0 = vld [vmem:[#allocation8 + $0x8] sm:$0xff]  ;;  %v94_v2 = vld [vmem:[#allocation8] sm:$0xff]  ;;  %v199_v32 = vstv %s476_s8 }
  0x14   :  { %v97_v1 = vld [vmem:[%s471_s3] sm:$0xf]  ;;  %144 = vmatpush.msra.mxu1 %v95_v0  ;;  %vm126_vm2 = vcmask 130048   ;;  %v171_v5 = vld [vmem:[#allocation9 + $0x78] sm:$0xff]  ;;  %v170_v6 = vld [vmem:[#allocation9 + $0x70] sm:$0xff]  ;;  %s387_s14 = smov [#allocation11]  }
  0x15   :  { %241 = vmatpush.msk.msra.mxu0 %vm102_vm0, %v97_v1  ;;  %v96_v3 = vld [vmem:[#allocation6] sm:$0x3]  ;;  %v93_v4 = vld [vmem:[#allocation3] sm:$0x3]  ;;  %176 = vmatpush.msra.mxu2 %v171_v5  ;;  %v168_v8 = vld [vmem:[#allocation9 + $0x60] sm:$0xff]  ;;  %s227_s15 = sshll.u32 %s387_s14, 4  ;;  %s228_s15 = int_to_ptr.vmem [resolvable:$true] %s227_s15 }
  0x16   :  { %242 = vmatmul.msk.f32.vlgmr.msra.gmra.mxu0 %vm98_vm1, %v96_v3  ;;  %145 = vmatpush.msra.mxu1 %v94_v2  ;;  %v169_v7 = vld [vmem:[#allocation9 + $0x68] sm:$0xff]  ;;  %v167_v9 = vld [vmem:[#allocation9 + $0x58] sm:$0xff]  ;;  %v166_v10 = vld [vmem:[#allocation9 + $0x50] sm:$0xff]  ;;  %s229_s18 = sshll.u32 %s477_s9, 4  ;;  %vm220_vm3 = vcmask 8192   ;;  %s230_s18 = int_to_ptr.hbm [resolvable:$true] %s229_s18 }
  0x17   :  { %243 = vmatmul.msk.f32.vlgmr.msra.gmra.mxu1 %vm126_vm2, %v93_v4  ;;  %177 = vmatpush.msra.mxu2 %v170_v6  ;;  %v165_v11 = vld [vmem:[#allocation9 + $0x48] sm:$0xff]  ;;  %v164_v12 = vld [vmem:[#allocation9 + $0x40] sm:$0xff]  ;;  %v163_v13 = vld [vmem:[#allocation9 + $0x38] sm:$0xff] }
  0x18   :  { %v162_v14 = vld [vmem:[#allocation9 + $0x30] sm:$0xff]  ;;  %v161_v15 = vld [vmem:[#allocation9 + $0x28] sm:$0xff]  ;;  %v160_v16 = vld [vmem:[#allocation9 + $0x20] sm:$0xff] }
  0x19   :  { %178 = vmatpush.msra.mxu2 %v169_v7  ;;  %v159_v17 = vld [vmem:[#allocation9 + $0x18] sm:$0xff]  ;;  %v158_v18 = vld [vmem:[#allocation9 + $0x10] sm:$0xff]  ;;  %v157_v19 = vld [vmem:[#allocation9 + $0x8] sm:$0xff] }
  0x1a   :  { %v156_v20 = vld [vmem:[#allocation9] sm:$0xff]  ;;  %v251_v22 = vld [vmem:[%s472_s4] ss:$0 sm:$0xff] }
  0x1b   :  { %179 = vmatpush.msra.mxu2 %v168_v8  ;;  %v252_v27 = vld [vmem:[%s474_s6] ss:$0 sm:$0xff] }
  0x1c   :  { %v197_v31 = vld [vmem:[%s475_s7] sm:$0x1] }
  0x1d   :  { %180 = vmatpush.msra.mxu2 %v167_v9 }
  0x1f   :  { %181 = vmatpush.msra.mxu2 %v166_v10 }
  0x21   :  { %182 = vmatpush.msra.mxu2 %v165_v11 }
  0x23   :  { %183 = vmatpush.msra.mxu2 %v164_v12 }
  0x25   :  { %184 = vmatpush.msra.mxu2 %v163_v13 }
  0x27   :  { %185 = vmatpush.msra.mxu2 %v162_v14 }
  0x29   :  { %186 = vmatpush.msra.mxu2 %v161_v15 }
  0x2b   :  { %187 = vmatpush.msra.mxu2 %v160_v16 }
  0x2d   :  { %188 = vmatpush.msra.mxu2 %v159_v17 }
  0x2f   :  { %189 = vmatpush.msra.mxu2 %v158_v18 }
  0x31   :  { %190 = vmatpush.msra.mxu2 %v157_v19 }
  0x33   :  { %191 = vmatpush.msra.mxu2 %v156_v20 }
  0x93   :  { %v123_v21 = vpop.f32.mrf.mxu0 }
  0x94   :  { %v147_v23 = vpop.f32.mrf.mxu1 }
  0x95   :  { %v148_v24 = vadd.f32 %v147_v23, %v123_v21 }
  0x97   :  { %v154_v25 = vadd.f32 %v251_v22, %v148_v24 }
  0x99   :  { %v155_v26 = vmax.f32 %v154_v25, 0.0 }
  0x9b   :  { %192 = vmatmul.f32.vlgmr.msra.gmra.mxu2 %v155_v26 }
 0x11e   :  { %v193_v28 = vpop.f32.mrf.mxu2 }
 0x11f   :  { %v194_v29 = vadd.f32 %v252_v27, %v193_v28 }
 0x121   :  { %v196_v30 = vmax.f32 %v194_v29, 0.0 }
 0x123   :  { %215 = vmatpush.xpose.msra.mxu3 %v196_v30 }
 0x126   :  { %216 = vmatmul.f32.vlgmr.msra.gmra.mxu3 %v197_v31 }
 0x1a9   :  { %v217_v33 = vpop.f32.mrf.mxu3 }
 0x1aa   :  { %v218_v34 = vadd.f32 %v217_v33, %v199_v32 }
 0x1ac   :  { %221 = vst.msk [vmem:[#allocation11] sm:$0x1] %vm220_vm3, %v218_v34 }
 0x1ad   :  { %232 = dma.vmem_to_hbm [thread:$0]  %s228_s15, 16, %s230_s18, [#allocation5]  }
 0x1ae   :  { %379 = dma.done.wait [#allocation5], 16  }
 0x1af   :  { %380 = vsyncadd [#allocation5], 4294967280 }
 0x1b0   :  { %237 = vsyncpa [#allocation4], 1 }
 0x1b1   :  { %238 = vsyncpa [#allocation7], 1 }
 0x1b2   :  { %239 = vsyncpa [#allocation10], 1 }
 0x1b3   :  { %240 = vsyncpa [#allocation5], 1 }

</bundles_post_ra>
